<compile_context>
chip_gen: v6e
topology: v6e:2x2x1
jax: 0.10.0
libtpu: 0.0.40
codegen_flags: <defaults>
</compile_context>

<pallas_src>
import functools

import jax
import jax.numpy as jnp
from jax.experimental import pallas as pl
from jax.experimental.pallas import tpu as pltpu

HIDDEN = 64
OUT = 2


def stream_kernel(x_ref, win_ref, acc_ref):
    """Grid = (num_splits, K-steps).  Axis 0 is 'parallel' (one split per
    TensorCore on v7x); axis 1 is the 'arbitrary' reduction over the flattened
    input features.  Each split accumulates its partial x @ W_in directly in
    its own resident (B, HIDDEN) f32 output block."""
    k = pl.program_id(1)

    @pl.when(k == 0)
    def _():
        acc_ref[...] = jnp.zeros_like(acc_ref)

    # Hot path: bf16 x-tile @ bf16 W_in-tile, f32 accumulate on the MXU.
    acc_ref[...] += jnp.dot(x_ref[...], win_ref[...],
                            preferred_element_type=jnp.float32)


def epilogue_kernel(parts_ref, bin_ref, w1_ref, b1_ref, w2_ref, b2_ref,
                    w3_ref, b3_ref, out_ref):
    """Combine the per-split partials and run the tiny rest of the MLP in f32."""
    h = parts_ref[0]
    for c in range(1, parts_ref.shape[0]):          # static unroll over splits
        h = h + parts_ref[c]
    h = jnp.maximum(h + bin_ref[...], 0.0)                                 # relu(input)
    h = jnp.maximum(
        jnp.dot(h, w1_ref[...], preferred_element_type=jnp.float32)
        + b1_ref[...], 0.0)                                                # relu(fc1)
    h = jnp.maximum(
        jnp.dot(h, w2_ref[...], preferred_element_type=jnp.float32)
        + b2_ref[...], 0.0)                                                # relu(fc2)
    logits = (jnp.dot(h, w3_ref[...], preferred_element_type=jnp.float32)
              + b3_ref[...])                                               # fc3
    # log_softmax along dim=1
    m = jnp.max(logits, axis=-1, keepdims=True)
    lse = jnp.log(jnp.sum(jnp.exp(logits - m), axis=-1, keepdims=True)) + m
    out_ref[...] = (logits - lse).astype(out_ref.dtype)


@functools.partial(jax.jit, static_argnames=("tk", "num_splits", "stream_buffers"))
def net_forward(x_flat, params, *, tk=8192, num_splits=2, stream_buffers=2):
    win, bin_, w1, b1, w2, b2, w3, b3 = params
    B, F = x_flat.shape

    # Clamp the K tile so the grid stays valid at small demo sizes; at the real
    # input_size=196608 the default tk=8192 gives 24 total steps (12/split).
    tk = min(tk, F // num_splits)
    assert F % (num_splits * tk) == 0, (F, num_splits, tk)
    steps = F // (num_splits * tk)

    # bf16 stream for the big first-layer matmul (f32 accumulate in-kernel).
    x_stream = x_flat.astype(jnp.bfloat16)

    def x_spec_kwargs():
        if stream_buffers > 2:
            return dict(pipeline_mode=pl.Buffered(stream_buffers))
        return {}

    stream_in_specs = [
        pl.BlockSpec((B, tk), lambda c, k: (0, c * steps + k), **x_spec_kwargs()),
        pl.BlockSpec((tk, HIDDEN), lambda c, k: (c * steps + k, 0), **x_spec_kwargs()),
    ]

    # VMEM footprint (double-buffered, bf16, tk=8192): ~2.1 MiB -> comfortably
    # under default scoped VMEM on v5e/v6e (32/128 MiB) and v7x (32/64 MiB), so
    # no explicit vmem_limit_bytes is needed.
    partials = pl.pallas_call(
        stream_kernel,
        out_shape=jax.ShapeDtypeStruct((num_splits, B, HIDDEN), jnp.float32),
        grid=(num_splits, steps),
        in_specs=stream_in_specs,
        out_specs=pl.BlockSpec((None, B, HIDDEN), lambda c, k: (c, 0, 0)),
        compiler_params=pltpu.CompilerParams(
            dimension_semantics=("parallel", "arbitrary")),
    )(x_stream, win)

    full2d = lambda shape: pl.BlockSpec(shape, lambda i: (0, 0))
    out = pl.pallas_call(
        epilogue_kernel,
        out_shape=jax.ShapeDtypeStruct((B, OUT), jnp.float32),
        grid=(1,),
        in_specs=[
            pl.BlockSpec((num_splits, B, HIDDEN), lambda i: (0, 0, 0)),
            full2d((1, HIDDEN)),          # b_in
            full2d((HIDDEN, HIDDEN)),     # W1
            full2d((1, HIDDEN)),          # b1
            full2d((HIDDEN, HIDDEN)),     # W2
            full2d((1, HIDDEN)),          # b2
            full2d((HIDDEN, OUT)),        # W3
            full2d((1, OUT)),             # b3
        ],
        out_specs=pl.BlockSpec((B, OUT), lambda i: (0, 0)),
        compiler_params=pltpu.CompilerParams(
            dimension_semantics=("arbitrary",)),
    )(partials, bin_, w1, b1, w2, b2, w3, b3)
    return out


def init_params(key, input_size):
    """Deterministic init mimicking nn.Linear's U(-1/sqrt(fan_in), +1/sqrt(fan_in)).
    Weights are stored as (in, out) (transposed vs. PyTorch's (out, in)).
    W_in is kept in bfloat16 (streamed layer); everything else stays f32."""
    def linear(key, fan_in, fan_out):
        kw, kb = jax.random.split(key)
        bound = 1.0 / jnp.sqrt(fan_in)
        w = jax.random.uniform(kw, (fan_in, fan_out), jnp.float32, -bound, bound)
        b = jax.random.uniform(kb, (1, fan_out), jnp.float32, -bound, bound)
        return w, b

    k0, k1, k2, k3 = jax.random.split(key, 4)
    win, bin_ = linear(k0, input_size, HIDDEN)
    win = win.astype(jnp.bfloat16)        # streamed layer in bf16 (f32 accumulate)
    w1, b1 = linear(k1, HIDDEN, HIDDEN)
    w2, b2 = linear(k2, HIDDEN, HIDDEN)
    w3, b3 = linear(k3, HIDDEN, OUT)
    return (win, bin_, w1, b1, w2, b2, w3, b3)


def reference_forward(x_flat, params):
    """Pure-JAX reference with the same numerics (bf16 first layer, f32 acc)."""
    win, bin_, w1, b1, w2, b2, w3, b3 = params
    h = jnp.dot(x_flat.astype(win.dtype), win,
                preferred_element_type=jnp.float32) + bin_
    h = jax.nn.relu(h)
    h = jax.nn.relu(h @ w1 + b1)
    h = jax.nn.relu(h @ w2 + b2)
    logits = h @ w3 + b3
    return jax.nn.log_softmax(logits, axis=1)


if __name__ == "__main__":
    B, C, H, W = 2, 3, 16, 16           # small shapes; flatten -> 768 features
    input_size = C * H * W

    key = jax.random.PRNGKey(0)
    kx, kp = jax.random.split(key)
    x = jax.random.normal(kx, (B, C, H, W), jnp.float32)  # NCHW, like PyTorch
    params = init_params(kp, input_size)

    x_flat = x.reshape(B, -1)           # x.view(x.size(0), -1)

    # tk=128 here so the demo exercises the multi-step K accumulation
    # (768 features / 2 splits / 128 = 3 steps per split).  At the real
    # input_size=196608 use the default tk=8192.
    out = net_forward(x_flat, params, tk=128, num_splits=2)
    out = jax.block_until_ready(out)

    ref = reference_forward(x_flat, params)
    assert out.shape == (B, OUT)
    assert jnp.allclose(out, ref, atol=1e-4, rtol=1e-4), (out, ref)

    print("KERNEL_OK")
</pallas_src>

<mosaic_0001>
module attributes {stable_mosaic.version = 11 : i64} {
  func.func @stream_kernel(%arg0: i32, %arg1: i32, %arg2: memref<2x128xbf16, #tpu.memory_space<vmem>>, %arg3: memref<128x64xbf16, #tpu.memory_space<vmem>>, %arg4: memref<1x2x64xf32, #tpu.memory_space<vmem>>) attributes {dimension_semantics = [#tpu.dimension_semantics<parallel>, #tpu.dimension_semantics<arbitrary>], iteration_bounds = array<i64: 2, 3>, scalar_prefetch = 0 : i64, scratch_operands = 0 : i64, tpu.core_type = #tpu.core_type<tc>, window_params = [{transform_indices = @transform_0, window_bounds = array<i64: 2, 128>}, {transform_indices = @transform_1, window_bounds = array<i64: 128, 64>}, {transform_indices = @transform_2, window_bounds = array<i64: 1, 2, 64>}]} {
    %c0_i32 = arith.constant 0 : i32
    %0 = arith.cmpi eq, %arg1, %c0_i32 : i32
    %1 = arith.extui %0 : i1 to i32
    %c0_i32_0 = arith.constant 0 : i32
    %2 = arith.cmpi ne, %1, %c0_i32_0 : i32
    scf.if %2 {
      %cst_10 = arith.constant 0.000000e+00 : f32
      %12 = vector.broadcast %cst_10 : f32 to vector<2x64xf32>
      %c0_11 = arith.constant 0 : index
      %c0_12 = arith.constant 0 : index
      %c0_13 = arith.constant 0 : index
      %13 = vector.load %arg4[%c0_11, %c0_12, %c0_13] : memref<1x2x64xf32, #tpu.memory_space<vmem>>, vector<1x2x64xf32>
      %14 = vector.shape_cast %13 : vector<1x2x64xf32> to vector<2x64xf32>
      %15 = vector.shape_cast %12 : vector<2x64xf32> to vector<1x2x64xf32>
      tpu.vector_store %arg4[%c0_11, %c0_12, %c0_13], %15 {strides = array<i32>} : memref<1x2x64xf32, #tpu.memory_space<vmem>>, vector<1x2x64xf32>,
    } else {
    }
    %c0 = arith.constant 0 : index
    %c0_1 = arith.constant 0 : index
    %c0_2 = arith.constant 0 : index
    %3 = vector.load %arg4[%c0, %c0_1, %c0_2] : memref<1x2x64xf32, #tpu.memory_space<vmem>>, vector<1x2x64xf32>
    %4 = vector.shape_cast %3 : vector<1x2x64xf32> to vector<2x64xf32>
    %c0_3 = arith.constant 0 : index
    %c0_4 = arith.constant 0 : index
    %5 = vector.load %arg2[%c0_3, %c0_4] : memref<2x128xbf16, #tpu.memory_space<vmem>>, vector<2x128xbf16>
    %c0_5 = arith.constant 0 : index
    %c0_6 = arith.constant 0 : index
    %6 = vector.load %arg3[%c0_5, %c0_6] : memref<128x64xbf16, #tpu.memory_space<vmem>>, vector<128x64xbf16>
    %cst = arith.constant dense<0.000000e+00> : vector<2x64xf32>
    %7 = tpu.matmul %5, %6, %cst {dimension_numbers = #tpu.dot_dimension_numbers<[1], [0], [0], [1], [0, 0, 1, 1], [], []>} : vector<2x128xbf16>, vector<128x64xbf16>, vector<2x64xf32> -> vector<2x64xf32>
    %8 = arith.addf %4, %7 : vector<2x64xf32>
    %c0_7 = arith.constant 0 : index
    %c0_8 = arith.constant 0 : index
    %c0_9 = arith.constant 0 : index
    %9 = vector.load %arg4[%c0_7, %c0_8, %c0_9] : memref<1x2x64xf32, #tpu.memory_space<vmem>>, vector<1x2x64xf32>
    %10 = vector.shape_cast %9 : vector<1x2x64xf32> to vector<2x64xf32>
    %11 = vector.shape_cast %8 : vector<2x64xf32> to vector<1x2x64xf32>
    tpu.vector_store %arg4[%c0_7, %c0_8, %c0_9], %11 {strides = array<i32>} : memref<1x2x64xf32, #tpu.memory_space<vmem>>, vector<1x2x64xf32>,
    return
  }
  func.func @transform_0(%arg0: i32, %arg1: i32) -> (i32, i32) {
    %c3_i32 = arith.constant 3 : i32
    %0 = arith.muli %arg0, %c3_i32 : i32
    %1 = arith.addi %0, %arg1 : i32
    %c0_i32 = arith.constant 0 : i32
    %c0_i32_0 = arith.constant 0 : i32
    return %c0_i32, %1 : i32, i32
  }
  func.func @transform_1(%arg0: i32, %arg1: i32) -> (i32, i32) {
    %c3_i32 = arith.constant 3 : i32
    %0 = arith.muli %arg0, %c3_i32 : i32
    %1 = arith.addi %0, %arg1 : i32
    %c0_i32 = arith.constant 0 : i32
    %c0_i32_0 = arith.constant 0 : i32
    return %1, %c0_i32 : i32, i32
  }
  func.func @transform_2(%arg0: i32, %arg1: i32) -> (i32, i32, i32) {
    %c0_i32 = arith.constant 0 : i32
    %c0_i32_0 = arith.constant 0 : i32
    %c0_i32_1 = arith.constant 0 : i32
    return %arg0, %c0_i32, %c0_i32_0 : i32, i32, i32
  }
}

module attributes {stable_mosaic.version = 11 : i64} {
  func.func @epilogue_kernel(%arg0: i32, %arg1: memref<2x2x64xf32, #tpu.memory_space<vmem>>, %arg2: memref<1x64xf32, #tpu.memory_space<vmem>>, %arg3: memref<64x64xf32, #tpu.memory_space<vmem>>, %arg4: memref<1x64xf32, #tpu.memory_space<vmem>>, %arg5: memref<64x64xf32, #tpu.memory_space<vmem>>, %arg6: memref<1x64xf32, #tpu.memory_space<vmem>>, %arg7: memref<64x2xf32, #tpu.memory_space<vmem>>, %arg8: memref<1x2xf32, #tpu.memory_space<vmem>>, %arg9: memref<2x2xf32, #tpu.memory_space<vmem>>) attributes {dimension_semantics = [#tpu.dimension_semantics<arbitrary>], iteration_bounds = array<i64: 1>, scalar_prefetch = 0 : i64, scratch_operands = 0 : i64, tpu.core_type = #tpu.core_type<tc>, window_params = [{pipeline_mode = #tpu.pipeline_mode<synchronous>, transform_indices = @transform_0, window_bounds = array<i64: 2, 2, 64>}, {pipeline_mode = #tpu.pipeline_mode<synchronous>, transform_indices = @transform_1, window_bounds = array<i64: 1, 64>}, {pipeline_mode = #tpu.pipeline_mode<synchronous>, transform_indices = @transform_2, window_bounds = array<i64: 64, 64>}, {pipeline_mode = #tpu.pipeline_mode<synchronous>, transform_indices = @transform_3, window_bounds = array<i64: 1, 64>}, {pipeline_mode = #tpu.pipeline_mode<synchronous>, transform_indices = @transform_4, window_bounds = array<i64: 64, 64>}, {pipeline_mode = #tpu.pipeline_mode<synchronous>, transform_indices = @transform_5, window_bounds = array<i64: 1, 64>}, {pipeline_mode = #tpu.pipeline_mode<synchronous>, transform_indices = @transform_6, window_bounds = array<i64: 64, 2>}, {pipeline_mode = #tpu.pipeline_mode<synchronous>, transform_indices = @transform_7, window_bounds = array<i64: 1, 2>}, {pipeline_mode = #tpu.pipeline_mode<synchronous>, transform_indices = @transform_8, window_bounds = array<i64: 2, 2>}]} {
    %c0 = arith.constant 0 : index
    %c0_0 = arith.constant 0 : index
    %c0_1 = arith.constant 0 : index
    %0 = vector.load %arg1[%c0, %c0_0, %c0_1] : memref<2x2x64xf32, #tpu.memory_space<vmem>>, vector<1x2x64xf32>
    %1 = vector.shape_cast %0 : vector<1x2x64xf32> to vector<2x64xf32>
    %c1 = arith.constant 1 : index
    %c0_2 = arith.constant 0 : index
    %c0_3 = arith.constant 0 : index
    %2 = vector.load %arg1[%c1, %c0_2, %c0_3] : memref<2x2x64xf32, #tpu.memory_space<vmem>>, vector<1x2x64xf32>
    %3 = vector.shape_cast %2 : vector<1x2x64xf32> to vector<2x64xf32>
    %4 = arith.addf %1, %3 : vector<2x64xf32>
    %c0_4 = arith.constant 0 : index
    %c0_5 = arith.constant 0 : index
    %5 = vector.load %arg2[%c0_4, %c0_5] : memref<1x64xf32, #tpu.memory_space<vmem>>, vector<1x64xf32>
    %6 = vector.broadcast %5 : vector<1x64xf32> to vector<2x64xf32>
    %7 = arith.addf %4, %6 : vector<2x64xf32>
    %cst = arith.constant 0.000000e+00 : f32
    %8 = vector.broadcast %cst : f32 to vector<2x64xf32>
    %9 = arith.maximumf %7, %8 : vector<2x64xf32>
    %c0_6 = arith.constant 0 : index
    %c0_7 = arith.constant 0 : index
    %10 = vector.load %arg3[%c0_6, %c0_7] : memref<64x64xf32, #tpu.memory_space<vmem>>, vector<64x64xf32>
    %cst_8 = arith.constant dense<0.000000e+00> : vector<2x64xf32>
    %11 = tpu.matmul %9, %10, %cst_8 {dimension_numbers = #tpu.dot_dimension_numbers<[1], [0], [0], [1], [0, 0, 1, 1], [], []>} : vector<2x64xf32>, vector<64x64xf32>, vector<2x64xf32> -> vector<2x64xf32>
    %c0_9 = arith.constant 0 : index
    %c0_10 = arith.constant 0 : index
    %12 = vector.load %arg4[%c0_9, %c0_10] : memref<1x64xf32, #tpu.memory_space<vmem>>, vector<1x64xf32>
    %13 = vector.broadcast %12 : vector<1x64xf32> to vector<2x64xf32>
    %14 = arith.addf %11, %13 : vector<2x64xf32>
    %cst_11 = arith.constant 0.000000e+00 : f32
    %15 = vector.broadcast %cst_11 : f32 to vector<2x64xf32>
    %16 = arith.maximumf %14, %15 : vector<2x64xf32>
    %c0_12 = arith.constant 0 : index
    %c0_13 = arith.constant 0 : index
    %17 = vector.load %arg5[%c0_12, %c0_13] : memref<64x64xf32, #tpu.memory_space<vmem>>, vector<64x64xf32>
    %cst_14 = arith.constant dense<0.000000e+00> : vector<2x64xf32>
    %18 = tpu.matmul %16, %17, %cst_14 {dimension_numbers = #tpu.dot_dimension_numbers<[1], [0], [0], [1], [0, 0, 1, 1], [], []>} : vector<2x64xf32>, vector<64x64xf32>, vector<2x64xf32> -> vector<2x64xf32>
    %c0_15 = arith.constant 0 : index
    %c0_16 = arith.constant 0 : index
    %19 = vector.load %arg6[%c0_15, %c0_16] : memref<1x64xf32, #tpu.memory_space<vmem>>, vector<1x64xf32>
    %20 = vector.broadcast %19 : vector<1x64xf32> to vector<2x64xf32>
    %21 = arith.addf %18, %20 : vector<2x64xf32>
    %cst_17 = arith.constant 0.000000e+00 : f32
    %22 = vector.broadcast %cst_17 : f32 to vector<2x64xf32>
    %23 = arith.maximumf %21, %22 : vector<2x64xf32>
    %c0_18 = arith.constant 0 : index
    %c0_19 = arith.constant 0 : index
    %24 = vector.load %arg7[%c0_18, %c0_19] : memref<64x2xf32, #tpu.memory_space<vmem>>, vector<64x2xf32>
    %cst_20 = arith.constant dense<0.000000e+00> : vector<2x2xf32>
    %25 = tpu.matmul %23, %24, %cst_20 {dimension_numbers = #tpu.dot_dimension_numbers<[1], [0], [0], [1], [0, 0, 1, 1], [], []>} : vector<2x64xf32>, vector<64x2xf32>, vector<2x2xf32> -> vector<2x2xf32>
    %c0_21 = arith.constant 0 : index
    %c0_22 = arith.constant 0 : index
    %26 = vector.load %arg8[%c0_21, %c0_22] : memref<1x2xf32, #tpu.memory_space<vmem>>, vector<1x2xf32>
    %27 = vector.broadcast %26 : vector<1x2xf32> to vector<2x2xf32>
    %28 = arith.addf %25, %27 : vector<2x2xf32>
    %cst_23 = arith.constant dense<0xFF800000> : vector<2xf32>
    %29 = vector.multi_reduction <maximumf>, %28, %cst_23 [1] : vector<2x2xf32> to vector<2xf32>
    %30 = vector.shape_cast %29 : vector<2xf32> to vector<2x1xf32>
    %31 = vector.broadcast %30 : vector<2x1xf32> to vector<2x2xf32>
    %32 = arith.subf %28, %31 : vector<2x2xf32>
    %33 = math.exp %32 : vector<2x2xf32>
    %cst_24 = arith.constant dense<0.000000e+00> : vector<2xf32>
    %34 = vector.multi_reduction <add>, %33, %cst_24 [1] : vector<2x2xf32> to vector<2xf32>
    %35 = vector.shape_cast %34 : vector<2xf32> to vector<2x1xf32>
    %36 = math.log %35 : vector<2x1xf32>
    %37 = arith.addf %36, %30 : vector<2x1xf32>
    %38 = vector.broadcast %37 : vector<2x1xf32> to vector<2x2xf32>
    %39 = arith.subf %28, %38 : vector<2x2xf32>
    %c0_25 = arith.constant 0 : index
    %c0_26 = arith.constant 0 : index
    %40 = vector.load %arg9[%c0_25, %c0_26] : memref<2x2xf32, #tpu.memory_space<vmem>>, vector<2x2xf32>
    tpu.vector_store %arg9[%c0_25, %c0_26], %39 {strides = array<i32>} : memref<2x2xf32, #tpu.memory_space<vmem>>, vector<2x2xf32>,
    return
  }
  func.func @transform_0(%arg0: i32) -> (i32, i32, i32) {
    %c0_i32 = arith.constant 0 : i32
    %c0_i32_0 = arith.constant 0 : i32
    %c0_i32_1 = arith.constant 0 : i32
    %c0_i32_2 = arith.constant 0 : i32
    return %c0_i32, %c0_i32_0, %c0_i32_1 : i32, i32, i32
  }
  func.func @transform_1(%arg0: i32) -> (i32, i32) {
    %c0_i32 = arith.constant 0 : i32
    %c0_i32_0 = arith.constant 0 : i32
    %c0_i32_1 = arith.constant 0 : i32
    return %c0_i32, %c0_i32_0 : i32, i32
  }
  func.func @transform_2(%arg0: i32) -> (i32, i32) {
    %c0_i32 = arith.constant 0 : i32
    %c0_i32_0 = arith.constant 0 : i32
    %c0_i32_1 = arith.constant 0 : i32
    return %c0_i32, %c0_i32_0 : i32, i32
  }
  func.func @transform_3(%arg0: i32) -> (i32, i32) {
    %c0_i32 = arith.constant 0 : i32
    %c0_i32_0 = arith.constant 0 : i32
    %c0_i32_1 = arith.constant 0 : i32
    return %c0_i32, %c0_i32_0 : i32, i32
  }
  func.func @transform_4(%arg0: i32) -> (i32, i32) {
    %c0_i32 = arith.constant 0 : i32
    %c0_i32_0 = arith.constant 0 : i32
    %c0_i32_1 = arith.constant 0 : i32
    return %c0_i32, %c0_i32_0 : i32, i32
  }
  func.func @transform_5(%arg0: i32) -> (i32, i32) {
    %c0_i32 = arith.constant 0 : i32
    %c0_i32_0 = arith.constant 0 : i32
    %c0_i32_1 = arith.constant 0 : i32
    return %c0_i32, %c0_i32_0 : i32, i32
  }
  func.func @transform_6(%arg0: i32) -> (i32, i32) {
    %c0_i32 = arith.constant 0 : i32
    %c0_i32_0 = arith.constant 0 : i32
    %c0_i32_1 = arith.constant 0 : i32
    return %c0_i32, %c0_i32_0 : i32, i32
  }
  func.func @transform_7(%arg0: i32) -> (i32, i32) {
    %c0_i32 = arith.constant 0 : i32
    %c0_i32_0 = arith.constant 0 : i32
    %c0_i32_1 = arith.constant 0 : i32
    return %c0_i32, %c0_i32_0 : i32, i32
  }
  func.func @transform_8(%arg0: i32) -> (i32, i32) {
    %c0_i32 = arith.constant 0 : i32
    %c0_i32_0 = arith.constant 0 : i32
    %c0_i32_1 = arith.constant 0 : i32
    return %c0_i32, %c0_i32_0 : i32, i32
  }
}

</mosaic_0001>

<bundles_post_ra>
// kernel: net_forward.3
= control target key start
LH: loop header
LB: loop body
LE: loop exit
PB: predicated region body
PF: predicated region fallthrough
CT: control target
= control target key end

     0   :  { %v460_v1 = vmov 0.0   ;;  %vm461_vm0 = vmmov 0   ;;  %s637_s0 = inlined_call_operand.vmem [shape: f32[2,2,64], index: 0, kind: input, shape index: {}]   ;;  %s638_s1 = inlined_call_operand.vmem [shape: f32[1,64], index: 1, kind: input, shape index: {}]   ;;  %s639_s2 = inlined_call_operand.vmem [shape: f32[64,64], index: 2, kind: input, shape index: {}]   ;;  %s640_s3 = inlined_call_operand.vmem [shape: f32[1,64], index: 3, kind: input, shape index: {}]   ;;  %s641_s4 = inlined_call_operand.vmem [shape: f32[64,64], index: 4, kind: input, shape index: {}]   ;;  %s642_s5 = inlined_call_operand.vmem [shape: f32[1,64], index: 5, kind: input, shape index: {}]   ;;  %s643_s6 = inlined_call_operand.vmem [shape: f32[64,2], index: 6, kind: input, shape index: {}]   ;;  %s644_s7 = inlined_call_operand.vmem [shape: f32[1,2], index: 7, kind: input, shape index: {}]   ;;  %s645_s8 = inlined_call_operand.hbm [shape: f32[2,2], index: 8, kind: output, shape index: {}]  }
   0x1   :  { %v50_v0 = vld [vmem:[%s639_s2 + $0x38] sm:$0xff]  ;;  %374 = vmatprep.subr.mxu0 %v460_v1  ;;  %v49_v2 = vld [vmem:[%s639_s2 + $0x30] sm:$0xff]  ;;  %390 = vmatprep.mubr.msk.f32.mxu0 %vm461_vm0, %v460_v1  ;;  %v30_v3 = vld [vmem:[%s637_s0] sm:$0x3] }
   0x2   :  { %375 = vmatpush3.msra.mxu0 %v50_v0  ;;  %393 = vmatprep.subr.mxu1 %v460_v1  ;;  %v48_v4 = vld [vmem:[%s639_s2 + $0x28] sm:$0xff]  ;;  %v339_v5 = vld [vmem:[%s637_s0 + $0x2] sm:$0x3]  ;;  %v140_v6 = vld [vmem:[%s641_s4 + $0x38] sm:$0xff] }
   0x3   :  { %376 = vmatprep.subr.mxu0 %v460_v1  ;;  %409 = vmatprep.mubr.msk.f32.mxu1 %vm461_vm0, %v460_v1  ;;  %v139_v7 = vld [vmem:[%s641_s4 + $0x30] sm:$0xff]  ;;  %v47_v8 = vld [vmem:[%s639_s2 + $0x20] sm:$0xff]  ;;  %v33_v9 = vadd.f32 %v339_v5, %v30_v3  ;;  %v138_v10 = vld [vmem:[%s641_s4 + $0x28] sm:$0xff] }
   0x4   :  { %377 = vmatpush3.msra.mxu0 %v49_v2  ;;  %394 = vmatpush3.msra.mxu1 %v140_v6 }
   0x5   :  { %378 = vmatprep.subr.mxu0 %v460_v1  ;;  %395 = vmatprep.subr.mxu1 %v460_v1 }
   0x6   :  { %13 = vsyncpa [#allocation3], 0  ;;  %379 = vmatpush3.msra.mxu0 %v48_v4  ;;  %v340_v11 = vld [vmem:[%s638_s1] ss:$0 sm:$0xff]  ;;  %396 = vmatpush3.msra.mxu1 %v139_v7  ;;  %v46_v12 = vld [vmem:[%s639_s2 + $0x18] sm:$0xff]  ;;  %vm58_vm1 = vcmask 523264  }
   0x7   :  { %380 = vmatprep.subr.mxu0 %v460_v1  ;;  %397 = vmatprep.subr.mxu1 %v460_v1  ;;  %v137_v13 = vld [vmem:[%s641_s4 + $0x20] sm:$0xff]  ;;  %v45_v14 = vld [vmem:[%s639_s2 + $0x10] sm:$0xff]  ;;  %v41_v15 = vadd.f32 %v340_v11, %v33_v9  ;;  %v136_v16 = vld [vmem:[%s641_s4 + $0x18] sm:$0xff]  ;;  %vm310_vm2 = vcmask 9216  }
   0x8   :  { %381 = vmatpush3.msra.mxu0 %v47_v8  ;;  %398 = vmatpush3.msra.mxu1 %v138_v10  ;;  %v44_v17 = vld [vmem:[%s639_s2 + $0x8] sm:$0xff]  ;;  %v43_v18 = vld [vmem:[%s639_s2] sm:$0xff]  ;;  %v135_v20 = vld [vmem:[%s641_s4 + $0x10] sm:$0xff] }
   0x9   :  { %382 = vmatprep.subr.mxu0 %v460_v1  ;;  %399 = vmatprep.subr.mxu1 %v460_v1  ;;  %v42_v19 = vmax.f32 %v41_v15, 0.0  ;;  %v134_v21 = vld [vmem:[%s641_s4 + $0x8] sm:$0xff]  ;;  %v133_v22 = vld [vmem:[%s641_s4] sm:$0xff]  ;;  %v229_v23 = vld [vmem:[%s643_s6 + $0x38] sm:$0xff] }
   0xa   :  { %383 = vmatpush3.msra.mxu0 %v46_v12  ;;  %400 = vmatpush3.msra.mxu1 %v137_v13  ;;  %v228_v24 = vld [vmem:[%s643_s6 + $0x30] sm:$0xff]  ;;  %v227_v25 = vld [vmem:[%s643_s6 + $0x28] sm:$0xff]  ;;  %v226_v26 = vld [vmem:[%s643_s6 + $0x20] sm:$0xff] }
   0xb   :  { %384 = vmatprep.subr.mxu0 %v460_v1  ;;  %401 = vmatprep.subr.mxu1 %v460_v1  ;;  %v225_v27 = vld [vmem:[%s643_s6 + $0x18] sm:$0xff]  ;;  %v341_v28 = vld [vmem:[%s640_s3] ss:$0 sm:$0xff]  ;;  %v224_v33 = vld [vmem:[%s643_s6 + $0x10] sm:$0xff] }
   0xc   :  { %385 = vmatpush3.msra.mxu0 %v45_v14  ;;  %402 = vmatpush3.msra.mxu1 %v136_v16  ;;  %v223_v34 = vld [vmem:[%s643_s6 + $0x8] sm:$0xff]  ;;  %v222_v35 = vld [vmem:[%s643_s6] sm:$0xff] }
   0xd   :  { %386 = vmatprep.subr.mxu0 %v460_v1  ;;  %403 = vmatprep.subr.mxu1 %v460_v1  ;;  %v343_v36 = vld [vmem:[%s642_s5] ss:$0 sm:$0xff]  ;;  %s462_s5 = smov [#allocation2]  }
   0xe   :  { %387 = vmatpush3.msra.mxu0 %v44_v17  ;;  %404 = vmatpush3.msra.mxu1 %v135_v20  ;;  %v345_v41 = vld [vmem:[%s644_s7] ss:$0 sm:$0xff]  ;;  %s331_s6 = sshll.u32 %s462_s5, 4  ;;  %s332_s6 = int_to_ptr.vmem [resolvable:$true] %s331_s6 }
   0xf   :  { %388 = vmatprep.subr.mxu0 %v460_v1  ;;  %405 = vmatprep.subr.mxu1 %v460_v1  ;;  %s438_s7 = scalar_lea.vmem %s332_s6, 32  ;;  %p443_p1 = scmp.lt.s32.totalorder %s332_s6, %s332_s6 }
  0x10   :  { %389 = vmatpush3.msra.mxu0 %v43_v18  ;;  %406 = vmatpush3.msra.mxu1 %v134_v21  ;;  %p439_p0 = scmp.ne.s32.totalorder %s332_s6, %s438_s7  ;;  %p444_p2 = scmp.lt.s32.totalorder %s438_s7, %s438_s7 }
  0x11   :  { %391 = vmatmul.mubr.msk.f32.vlgmr.msra.gmra.mxu0 %vm58_vm1, %v42_v19  ;;  %412 = vmatprep.subr.mxu0 %v460_v1 }
  0x12   :  { %428 = vmatprep.mubr.msk.f32.mxu0 %vm461_vm0, %v460_v1  ;;  %407 = vmatprep.subr.mxu1 %v460_v1  ;;  %p445_p3 = por %p444_p2, %p443_p1 }
  0x13   :  { %408 = vmatpush3.msra.mxu1 %v133_v22  ;;  %413 = vmatpush3.msra.mxu0 %v229_v23 }
  0x14   :  { %414 = vmatprep.subr.mxu0 %v460_v1  ;;  %p446_p4 = pnand %p445_p3, %p439_p0 }
  0x15   :  { %415 = vmatpush3.msra.mxu0 %v228_v24 }
  0x16   :  { %416 = vmatprep.subr.mxu0 %v460_v1 }
  0x17   :  { %417 = vmatpush3.msra.mxu0 %v227_v25 }
  0x18   :  { %418 = vmatprep.subr.mxu0 %v460_v1 }
  0x19   :  { %419 = vmatpush3.msra.mxu0 %v226_v26 }
  0x1a   :  { %420 = vmatprep.subr.mxu0 %v460_v1 }
  0x1b   :  { %421 = vmatpush3.msra.mxu0 %v225_v27 }
  0x1c   :  { %422 = vmatprep.subr.mxu0 %v460_v1 }
  0x1d   :  { %423 = vmatpush3.msra.mxu0 %v224_v33 }
  0x1e   :  { %424 = vmatprep.subr.mxu0 %v460_v1 }
  0x1f   :  { %425 = vmatpush3.msra.mxu0 %v223_v34 }
  0x20   :  { %426 = vmatprep.subr.mxu0 %v460_v1 }
  0x21   :  { %427 = vmatpush3.msra.mxu0 %v222_v35 }
  0xd1   :  { %v128_v29 = vpop.f32.mrf.mxu0 }
  0xd2   :  { %v129_v30 = vadd.f32 %v341_v28, %v128_v29 }
  0xd3   :  { %v392_v31 = vpop.f32.mrf.mxu0 }
  0xd4   :  { %v132_v32 = vmax.f32 %v129_v30, 0.0 }
  0xd6   :  { %410 = vmatmul.mubr.msk.f32.vlgmr.msra.gmra.mxu1 %vm58_vm1, %v132_v32 }
 0x196   :  { %v217_v37 = vpop.f32.mrf.mxu1 }
 0x197   :  { %v218_v38 = vadd.f32 %v343_v36, %v217_v37 }
 0x198   :  { %v411_v39 = vpop.f32.mrf.mxu1 }
 0x199   :  { %v221_v40 = vmax.f32 %v218_v38, 0.0 }
 0x19b   :  { %429 = vmatmul.mubr.msk.f32.vlgmr.msra.gmra.mxu0 %vm58_vm1, %v221_v40 }
 0x25b   :  { %v306_v42 = vpop.f32.mrf.mxu0 }
 0x25c   :  { %v307_v43 = vadd.f32 %v345_v41, %v306_v42 }
 0x25d   :  { %v430_v44 = vpop.f32.mrf.mxu0 }
 0x25e   :  { %v311_v45 = vsel %vm310_vm2, %v307_v43, -inf }
 0x25f   :  { %312 = vmax.xlane.f32.xlu0 %v311_v45 }
 0x2e8   :  { %v313_v46 = vpop.xlane.xlu0 %312 }
 0x2e9   :  { %v314_v47 = vsub.f32 %v307_v43, %v313_v46 }
 0x2eb   :  { %v315_v48 = vmul.f32 1.442695, %v314_v47 }
 0x2ed   :  { %434 = vpow2.f32 %v315_v48 }
 0x2fa   :  { %v435_v49 = vpop.eup %434 }
 0x2fb   :  { %v317_v50 = vsel %vm310_vm2, %v435_v49, 0.0 }
 0x2fc   :  { %318 = vadd.xlane.f32.xlu0 %v317_v50 }
 0x385   :  { %v319_v51 = vpop.xlane.xlu0 %318 }
 0x386   :  { %436 = vlog2.f32 %v319_v51 }
 0x393   :  { %v437_v52 = vpop.eup %436 }
 0x394   :  { %v321_v53 = vmul.f32 0.6931472, %v437_v52 }
 0x396   :  { %v322_v54 = vadd.f32 %v321_v53, %v313_v46 }
 0x398   :  { %v323_v55 = vsub.f32 %v307_v43, %v322_v54 }
 0x39a   :  { %324 = vst.msk [vmem:[#allocation2] sm:$0x3] %vm310_vm2, %v323_v55 }
 0x39b   :  { %449 = shalt.err (!%p446_p4)
}
 0x39c   :  { %334 = dma.vmem_to_hbm [thread:$0]  %s332_s6, 32, %s645_s8, [#allocation3]  }
 0x39d   :  { %458 = dma.done.wait [#allocation3], 32  }
 0x39e   :  { %459 = vsyncadd [#allocation3], 4294967264 }
 0x39f   :  { %338 = vsyncpa [#allocation3], 1 }

// kernel: net_forward.2
= control target key start
LH: loop header
LB: loop body
LE: loop exit
PB: predicated region body
PF: predicated region fallthrough
CT: control target
= control target key end

     0   :  { %s544_s9 = smov 0   ;;  %s546_s10 = smov 0   ;;  %s625_s0 = inlined_call_operand.vmem [shape: bf16[2,768], index: 0, kind: input, shape index: {}]   ;;  %s626_s1 = inlined_call_operand.vmem [shape: bf16[768,64], index: 1, kind: input, shape index: {}]   ;;  %s627_s2 = inlined_call_operand.vmem [shape: f32[2,2,64], index: 2, kind: output, shape index: {}]  }
   0x1   :  { %s548_s11 = smov 0   ;;  %s550_s12 = smov 0  }
   0x2   :  { %s552_s13 = smov 0  }
   0x3 LB: > { %s21_s14 = sadd.s32 1, %s516_s11  ;;  %s24_s15 = sadd.s32 1, %s520_s12  ;;  %s524_s13 = sphi %s552_s13, %s12_s13   ;;  %s520_s12 = sphi %s550_s12, %s631_s12   ;;  %s516_s11 = sphi %s548_s11, %s630_s11   ;;  %s512_s10 = sphi %s546_s10, %s629_s10   ;;  %s508_s9 = sphi %s544_s9, %s628_s9  }
   0x4   : > { %p22_p0 = scmp.ge.s32.totalorder %s21_s14, 3  ;;  %p391_p1 = scmp.ge.s32.totalorder %s524_s13, 1 }
   0x5   : > { %p149_p2 = scmp.lt.s32.totalorder %s524_s13, 7 }
   0x6   : > { %s633_s14 = smov (%p22_p0, %s21_s14), 0  ;;  %s635_s15 = smov (!%p22_p0, %s24_s15), %s520_s12 }
   0x7   : > { %p150_p3 = pnand %p391_p1, %p149_p2  ;;  %p26_p4 = scmp.ge.s32.totalorder %s635_s15, 2 }
   0x8   : > { %s177_s16 = smul.u32 (!%p150_p3), 3, %s512_s10  ;;  %p194_p7 = scmp.lt.s32.totalorder (!%p150_p3), %s512_s10, 1 }
   0x9   : > { %s637_s15 = smov (%p26_p4, %s635_s15), 0  ;;  %153 = sbr.rel (%p150_p3) target bundleno = 256 (0x100), region = 28 }
   0xa   : > { %s178_s17 = sadd.s32 (!%p150_p3), %s508_s9, %s177_s16  ;;  %p395_p8 = scmp.ne.s32.totalorder (!%p150_p3), %s508_s9, 0 }
   0xb   : > { %p179_p5 = scmp.lt.s32.totalorder (!%p150_p3), %s178_s17, 5  ;;  %s392_s18 = sshll.u32 (!%p150_p3), %s178_s17, 4 }
   0xc   : > { %p187_p6 = scmp.lt.s32.totalorder (!%p150_p3), %s392_s18, 95 }
   0xe   : > { %s639_s17 = smov (!%p179_p5, %s178_s17), 5  ;;  %s641_s18 = smov (!%p187_p6, %s392_s18), 95 }
   0xf   : > { %s181_s21 = scalar_lea.vmem %s625_s0, %s639_s17  ;;  %s393_s22 = sshll.u32 %s641_s18, 2 }
  0x10   : > { %s586_s25 = scalar_lea.vmem %s626_s1, %s393_s22  ;;  %s643_s10 = smov (!%p194_p7, %s512_s10), 1 }
  0x11   : > { %s394_s26 = sshll.u32 %s643_s10, 1  ;;  %202 = sbr.rel (%p395_p8) target bundleno = 24 (0x18), region = 32 }
  0x12   : > { %s591_s29 = scalar_lea.vmem %s627_s2, %s394_s26 }
  0x16   : > { %vm203_vm0 = vcmask 517120   ;;  %v526_v0 = vmov 0.0  }
  0x17   : > { %204 = vst.msk [vmem:[%s591_s29] sm:$0x3] %vm203_vm0, %v526_v0 }
  0x18 PF: > { %v478_v1 = vld [vmem:[%s586_s25 + $0x38] sm:$0xff]   ;;  %v527_v2 = vmov 0.0   ;;  %v479_v3 = vld [vmem:[%s586_s25 + $0x30] sm:$0xff]   ;;  %vm528_vm1 = vmmov 0   ;;  %v480_v4 = vld [vmem:[%s586_s25 + $0x28] sm:$0xff]   ;;  %vm312_vm2 = vcmask 517120  }
  0x19   : > { %415 = vmatprep.subr.bf16.mxu0 %v527_v2  ;;  %431 = vmatprep.mubr.msk.bf16.mxu0 %vm528_vm1, %v527_v2  ;;  %v481_v5 = vld [vmem:[%s586_s25 + $0x20] sm:$0xff]   ;;  %v482_v6 = vld [vmem:[%s586_s25 + $0x18] sm:$0xff]   ;;  %v483_v7 = vld [vmem:[%s586_s25 + $0x10] sm:$0xff]  }
  0x1a   : > { %416 = vmatpush3.bf16.msra.mxu0 %v478_v1  ;;  %v484_v8 = vld [vmem:[%s586_s25 + $0x8] sm:$0xff]   ;;  %v485_v9 = vld [vmem:[%s586_s25] sm:$0xff]  }
  0x1b   : > { %417 = vmatprep.subr.bf16.mxu0 %v527_v2  ;;  %v206_v10 = vld [vmem:[%s181_s21] sm:$0x1] }
  0x1e   : > { %418 = vmatpush3.bf16.msra.mxu0 %v479_v3  ;;  %v205_v11 = vld [vmem:[%s591_s29] sm:$0x3] }
  0x1f   : > { %419 = vmatprep.subr.bf16.mxu0 %v527_v2 }
  0x22   : > { %420 = vmatpush3.bf16.msra.mxu0 %v480_v4 }
  0x23   : > { %421 = vmatprep.subr.bf16.mxu0 %v527_v2 }
  0x26   : > { %422 = vmatpush3.bf16.msra.mxu0 %v481_v5 }
  0x27   : > { %423 = vmatprep.subr.bf16.mxu0 %v527_v2 }
  0x2a   : > { %424 = vmatpush3.bf16.msra.mxu0 %v482_v6 }
  0x2b   : > { %425 = vmatprep.subr.bf16.mxu0 %v527_v2 }
  0x2e   : > { %426 = vmatpush3.bf16.msra.mxu0 %v483_v7 }
  0x2f   : > { %427 = vmatprep.subr.bf16.mxu0 %v527_v2 }
  0x32   : > { %428 = vmatpush3.bf16.msra.mxu0 %v484_v8 }
  0x33   : > { %429 = vmatprep.subr.bf16.mxu0 %v527_v2 }
  0x36   : > { %430 = vmatpush3.bf16.msra.mxu0 %v485_v9 }
  0x39   : > { %432 = vmatmul.mubr.bf16.vlgmr.msra.gmra.mxu0 %v206_v10 }
  0xf9   : > { %v305_v12 = vpop.f32.mrf.mxu0 }
  0xfa   : > { %v311_v13 = vadd.f32 %v305_v12, %v205_v11 }
  0xfb   : > { %v433_v14 = vpop.f32.mrf.mxu0 }
  0xfc   : > { %313 = vst.msk [vmem:[%s591_s29] sm:$0x3] %vm312_vm2, %v311_v13 }
  0xfd   : > { %v308_v15 = vpop.f32.mrf.mxu0 }
  0xff   : > { %v434_v16 = vpop.f32.mrf.mxu0 }
 0x100 PF: > { %s12_s13 = sadd.s32 1, %s524_s13   ;;  %s628_s9 = smov %s516_s11 }
 0x101   : > { %p9_p9 = scmp.ge.s32.totalorder %s12_s13, 8   ;;  %s629_s10 = smov %s520_s12 }
 0x102   : > { %s630_s11 = smov %s633_s14  ;;  %s631_s12 = smov %s637_s15 }
 0x103   :  { %11 = sbr.rel (!%p9_p9) target bundleno = 3 (0x3), region = 65 }

</bundles_post_ra>
